<compile_context>
chip_gen: v5e
topology: v5e:2x2
jax: 0.10.0
libtpu: 0.0.40
codegen_flags: <defaults>
</compile_context>

<pallas_src>
import functools

import jax
import jax.numpy as jnp
from jax.experimental import pallas as pl
from jax.experimental.pallas import tpu as pltpu

BN_EPS = 1e-5
_VMEM_LIMIT = 64 * 1024 * 1024       # <= physical VMEM on all of v5e/v6e/v7x
_FUSED_MAX_BATCH = 512               # single fused kernel up to this many rows


# --------------------------------------------------------------------------
# Fused single-block kernel (small batch: whole problem fits VMEM at once).
# --------------------------------------------------------------------------
def _fused_kernel(x_ref, w1_ref, gamma_ref, beta_ref, w2_ref, b2_ref, o_ref,
                  *, inv_b):
    # Linear 1 on the MXU: bf16 inputs, f32 accumulation. (b1 omitted: BN
    # mean-subtraction cancels any constant per-feature offset.)
    h = jnp.dot(x_ref[...].astype(jnp.bfloat16), w1_ref[...],
                preferred_element_type=jnp.float32)

    # One-pass batch statistics (biased variance, PyTorch BN training mode).
    s = jnp.sum(h, axis=0, keepdims=True)
    ssq = jnp.sum(h * h, axis=0, keepdims=True)
    mean = s * inv_b
    var = ssq * inv_b - mean * mean
    inv_std = jax.lax.rsqrt(var + BN_EPS)

    # Fold BN affine into one scale/shift, fuse with ReLU.
    scale = gamma_ref[...] * inv_std            # [1, H]
    shift = beta_ref[...] - mean * scale        # [1, H]
    h_act = jnp.maximum(h * scale + shift, 0.0)

    # Linear 2 on the MXU.
    out = jnp.dot(h_act.astype(jnp.bfloat16), w2_ref[...],
                  preferred_element_type=jnp.float32) + b2_ref[...]
    o_ref[...] = out.astype(o_ref.dtype)


# --------------------------------------------------------------------------
# Two-pass batch-tiled kernels (large batch: BN needs FULL-batch statistics,
# so stats are accumulated in pass 1 and applied per-tile in pass 2).
# --------------------------------------------------------------------------
def _stats_kernel(x_ref, w1_ref, sum_ref, sumsq_ref):
    """Pass 1: h = x_tile @ w1; accumulate per-feature sum / sum-of-squares.
    The output blocks use a constant index_map -> stay resident (accumulators).
    """
    @pl.when(pl.program_id(0) == 0)
    def _():
        sum_ref[...] = jnp.zeros_like(sum_ref)
        sumsq_ref[...] = jnp.zeros_like(sumsq_ref)

    h = jnp.dot(x_ref[...].astype(jnp.bfloat16), w1_ref[...],
                preferred_element_type=jnp.float32)
    sum_ref[...] += jnp.sum(h, axis=0, keepdims=True)
    sumsq_ref[...] += jnp.sum(h * h, axis=0, keepdims=True)


def _apply_kernel(x_ref, w1_ref, sum_ref, sumsq_ref, gamma_ref, beta_ref,
                  w2_ref, b2_ref, o_ref, *, inv_b):
    """Pass 2: recompute h = x_tile @ w1 (cheaper than round-tripping [B,H]
    through HBM), apply folded BN + ReLU, then Linear 2. Tiles independent."""
    h = jnp.dot(x_ref[...].astype(jnp.bfloat16), w1_ref[...],
                preferred_element_type=jnp.float32)

    mean = sum_ref[...] * inv_b
    var = sumsq_ref[...] * inv_b - mean * mean
    inv_std = jax.lax.rsqrt(var + BN_EPS)
    scale = gamma_ref[...] * inv_std            # [1, H]
    shift = beta_ref[...] - mean * scale        # [1, H]

    h_act = jnp.maximum(h * scale + shift, 0.0)

    out = jnp.dot(h_act.astype(jnp.bfloat16), w2_ref[...],
                  preferred_element_type=jnp.float32) + b2_ref[...]
    o_ref[...] = out.astype(o_ref.dtype)


def _pick_batch_tile(b):
    for tm in (1024, 512, 256, 128, 64, 32, 16, 8):
        if b % tm == 0:
            return tm
    return b


# --------------------------------------------------------------------------
# Wrapper
# --------------------------------------------------------------------------
def predictor_forward(x, w1, b1, gamma, beta, w2, b2, *, batch_tile=None):
    """x: [B, D]; w1: [D, H]; b1/gamma/beta: [1, H]; w2: [H, D]; b2: [1, D].

    b1 is accepted for parity with nn.Linear but is mathematically cancelled
    by the BatchNorm mean subtraction, so it is not fed to the kernels.
    """
    del b1  # cancelled by BN; keeps the module interface intact
    B, D = x.shape
    H = w1.shape[1]

    if batch_tile is None:
        fused = B <= _FUSED_MAX_BATCH
        tm = B if fused else _pick_batch_tile(B)
    else:
        tm = batch_tile
        fused = (tm == B)
    assert B % tm == 0, "batch must be divisible by the batch tile"
    nb = B // tm
    inv_b = 1.0 / B

    # Cast weights to bf16 once; both passes reuse them (halves weight DMA,
    # MXU is bf16-native with f32 accumulation).
    w1_bf = w1.astype(jnp.bfloat16)
    w2_bf = w2.astype(jnp.bfloat16)

    if fused:
        full = lambda shape: pl.BlockSpec(shape, lambda: (0,) * len(shape))
        return pl.pallas_call(
            functools.partial(_fused_kernel, inv_b=inv_b),
            out_shape=jax.ShapeDtypeStruct((B, D), jnp.float32),
            grid=(),
            in_specs=[
                full((B, D)),   # x
                full((D, H)),   # w1 (bf16)
                full((1, H)),   # gamma
                full((1, H)),   # beta
                full((H, D)),   # w2 (bf16)
                full((1, D)),   # b2
            ],
            out_specs=full((B, D)),
            compiler_params=pltpu.CompilerParams(vmem_limit_bytes=_VMEM_LIMIT),
        )(x, w1_bf, gamma, beta, w2_bf, b2)

    # ---- batch-tiled two-pass path ----
    x_spec = pl.BlockSpec((tm, D), lambda i: (i, 0))
    o_spec = pl.BlockSpec((tm, D), lambda i: (i, 0))
    w1_spec = pl.BlockSpec((D, H), lambda i: (0, 0))    # resident across tiles
    w2_spec = pl.BlockSpec((H, D), lambda i: (0, 0))    # resident across tiles
    row_h = pl.BlockSpec((1, H), lambda i: (0, 0))
    row_d = pl.BlockSpec((1, D), lambda i: (0, 0))

    # Pass 1: full-batch BN statistics (accumulated over the batch grid axis).
    h_sum, h_sumsq = pl.pallas_call(
        _stats_kernel,
        out_shape=(jax.ShapeDtypeStruct((1, H), jnp.float32),
                   jax.ShapeDtypeStruct((1, H), jnp.float32)),
        grid=(nb,),
        in_specs=[x_spec, w1_spec],
        out_specs=(row_h, row_h),
        compiler_params=pltpu.CompilerParams(
            dimension_semantics=("arbitrary",),   # accumulator axis
            vmem_limit_bytes=_VMEM_LIMIT),
    )(x, w1_bf)

    # Pass 2: normalize + ReLU + Linear 2, per independent batch tile.
    return pl.pallas_call(
        functools.partial(_apply_kernel, inv_b=inv_b),
        out_shape=jax.ShapeDtypeStruct((B, D), jnp.float32),
        grid=(nb,),
        in_specs=[x_spec, w1_spec, row_h, row_h, row_h, row_h, w2_spec, row_d],
        out_specs=o_spec,
        compiler_params=pltpu.CompilerParams(
            dimension_semantics=("parallel",),    # megacore sharding on v7x
            vmem_limit_bytes=_VMEM_LIMIT),
    )(x, w1_bf, h_sum, h_sumsq, gamma, beta, w2_bf, b2)


# --------------------------------------------------------------------------
# Pure-JAX reference (PyTorch train-mode semantics, same bf16-in / f32-acc
# matmul precision as the kernel).
# --------------------------------------------------------------------------
def reference_forward(x, w1, b1, gamma, beta, w2, b2):
    dot = lambda a, b: jnp.dot(a.astype(jnp.bfloat16), b.astype(jnp.bfloat16),
                               preferred_element_type=jnp.float32)
    h = dot(x, w1) + b1
    mean = jnp.mean(h, axis=0, keepdims=True)
    var = jnp.mean((h - mean) ** 2, axis=0, keepdims=True)  # biased, BN train mode
    h = (h - mean) / jnp.sqrt(var + BN_EPS) * gamma + beta
    h = jnp.maximum(h, 0.0)
    return dot(h, w2) + b2


if __name__ == "__main__":
    key = jax.random.PRNGKey(0)

    def make_params(k, proj_dim, hidden):
        kw1, kb1, kg, kbt, kw2, kb2 = jax.random.split(k, 6)
        w1 = jax.random.normal(kw1, (proj_dim, hidden), jnp.float32) * proj_dim ** -0.5
        b1 = jax.random.normal(kb1, (1, hidden), jnp.float32) * 0.01
        gamma = 1.0 + 0.1 * jax.random.normal(kg, (1, hidden), jnp.float32)
        beta = 0.1 * jax.random.normal(kbt, (1, hidden), jnp.float32)
        w2 = jax.random.normal(kw2, (hidden, proj_dim), jnp.float32) * hidden ** -0.5
        b2 = jax.random.normal(kb2, (1, proj_dim), jnp.float32) * 0.01
        return w1, b1, gamma, beta, w2, b2

    # Case 1: small shapes consistent with the module -> fused single-block path.
    B, D, H = 8, 128, 256
    kx, kp, key = jax.random.split(key, 3)
    x = jax.random.normal(kx, (B, D), jnp.float32)
    params = make_params(kp, D, H)

    out = jax.block_until_ready(predictor_forward(x, *params))
    ref = reference_forward(x, *params)
    assert out.shape == (B, D)
    assert jnp.allclose(out, ref, atol=5e-3, rtol=5e-3), "mismatch (fused path)"

    # Case 2: larger batch, forced batch tile -> two-pass tiled path
    # (full-batch BN stats accumulated in pass 1, applied per-tile in pass 2).
    B2 = 256
    kx2, kp2 = jax.random.split(key, 2)
    x2 = jax.random.normal(kx2, (B2, D), jnp.float32)
    params2 = make_params(kp2, D, H)

    out2 = jax.block_until_ready(predictor_forward(x2, *params2, batch_tile=64))
    ref2 = reference_forward(x2, *params2)
    assert out2.shape == (B2, D)
    assert jnp.allclose(out2, ref2, atol=5e-3, rtol=5e-3), "mismatch (tiled path)"

    # TODO(synk): BatchNorm1d running_mean/running_var buffer updates (train-time
    # side effect only) are not implemented; forward output is unaffected.
    print("KERNEL_OK")
</pallas_src>

<mosaic_0001>
module attributes {stable_mosaic.version = 11 : i64} {
  func.func @_fused_kernel(%arg0: memref<8x128xf32, #tpu.memory_space<vmem>>, %arg1: memref<128x256xbf16, #tpu.memory_space<vmem>>, %arg2: memref<1x256xf32, #tpu.memory_space<vmem>>, %arg3: memref<1x256xf32, #tpu.memory_space<vmem>>, %arg4: memref<256x128xbf16, #tpu.memory_space<vmem>>, %arg5: memref<1x128xf32, #tpu.memory_space<vmem>>, %arg6: memref<8x128xf32, #tpu.memory_space<vmem>>) attributes {dimension_semantics = [], scalar_prefetch = 0 : i64, scratch_operands = 0 : i64, tpu.core_type = #tpu.core_type<tc>} {
    %c0 = arith.constant 0 : index
    %c0_0 = arith.constant 0 : index
    %0 = vector.load %arg0[%c0, %c0_0] : memref<8x128xf32, #tpu.memory_space<vmem>>, vector<8x128xf32>
    %1 = arith.truncf %0 : vector<8x128xf32> to vector<8x128xbf16>
    %c0_1 = arith.constant 0 : index
    %c0_2 = arith.constant 0 : index
    %2 = vector.load %arg1[%c0_1, %c0_2] : memref<128x256xbf16, #tpu.memory_space<vmem>>, vector<128x256xbf16>
    %cst = arith.constant dense<0.000000e+00> : vector<8x256xf32>
    %3 = tpu.matmul %1, %2, %cst {dimension_numbers = #tpu.dot_dimension_numbers<[1], [0], [0], [1], [0, 0, 1, 1], [], []>} : vector<8x128xbf16>, vector<128x256xbf16>, vector<8x256xf32> -> vector<8x256xf32>
    %cst_3 = arith.constant dense<0.000000e+00> : vector<256xf32>
    %4 = vector.multi_reduction <add>, %3, %cst_3 [0] : vector<8x256xf32> to vector<256xf32>
    %5 = vector.shape_cast %4 : vector<256xf32> to vector<1x256xf32>
    %6 = arith.mulf %3, %3 : vector<8x256xf32>
    %cst_4 = arith.constant dense<0.000000e+00> : vector<256xf32>
    %7 = vector.multi_reduction <add>, %6, %cst_4 [0] : vector<8x256xf32> to vector<256xf32>
    %8 = vector.shape_cast %7 : vector<256xf32> to vector<1x256xf32>
    %cst_5 = arith.constant 1.250000e-01 : f32
    %9 = vector.broadcast %cst_5 : f32 to vector<1x256xf32>
    %10 = arith.mulf %5, %9 : vector<1x256xf32>
    %cst_6 = arith.constant 1.250000e-01 : f32
    %11 = vector.broadcast %cst_6 : f32 to vector<1x256xf32>
    %12 = arith.mulf %8, %11 : vector<1x256xf32>
    %13 = arith.mulf %10, %10 : vector<1x256xf32>
    %14 = arith.subf %12, %13 : vector<1x256xf32>
    %cst_7 = arith.constant 9.99999974E-6 : f32
    %15 = vector.broadcast %cst_7 : f32 to vector<1x256xf32>
    %16 = arith.addf %14, %15 : vector<1x256xf32>
    %17 = math.rsqrt %16 : vector<1x256xf32>
    %c0_8 = arith.constant 0 : index
    %c0_9 = arith.constant 0 : index
    %18 = vector.load %arg2[%c0_8, %c0_9] : memref<1x256xf32, #tpu.memory_space<vmem>>, vector<1x256xf32>
    %19 = arith.mulf %18, %17 : vector<1x256xf32>
    %c0_10 = arith.constant 0 : index
    %c0_11 = arith.constant 0 : index
    %20 = vector.load %arg3[%c0_10, %c0_11] : memref<1x256xf32, #tpu.memory_space<vmem>>, vector<1x256xf32>
    %21 = arith.mulf %10, %19 : vector<1x256xf32>
    %22 = arith.subf %20, %21 : vector<1x256xf32>
    %23 = vector.broadcast %19 : vector<1x256xf32> to vector<8x256xf32>
    %24 = arith.mulf %3, %23 : vector<8x256xf32>
    %25 = vector.broadcast %22 : vector<1x256xf32> to vector<8x256xf32>
    %26 = arith.addf %24, %25 : vector<8x256xf32>
    %cst_12 = arith.constant 0.000000e+00 : f32
    %27 = vector.broadcast %cst_12 : f32 to vector<8x256xf32>
    %28 = arith.maximumf %26, %27 : vector<8x256xf32>
    %29 = arith.truncf %28 : vector<8x256xf32> to vector<8x256xbf16>
    %c0_13 = arith.constant 0 : index
    %c0_14 = arith.constant 0 : index
    %30 = vector.load %arg4[%c0_13, %c0_14] : memref<256x128xbf16, #tpu.memory_space<vmem>>, vector<256x128xbf16>
    %cst_15 = arith.constant dense<0.000000e+00> : vector<8x128xf32>
    %31 = tpu.matmul %29, %30, %cst_15 {dimension_numbers = #tpu.dot_dimension_numbers<[1], [0], [0], [1], [0, 0, 1, 1], [], []>} : vector<8x256xbf16>, vector<256x128xbf16>, vector<8x128xf32> -> vector<8x128xf32>
    %c0_16 = arith.constant 0 : index
    %c0_17 = arith.constant 0 : index
    %32 = vector.load %arg5[%c0_16, %c0_17] : memref<1x128xf32, #tpu.memory_space<vmem>>, vector<1x128xf32>
    %33 = vector.broadcast %32 : vector<1x128xf32> to vector<8x128xf32>
    %34 = arith.addf %31, %33 : vector<8x128xf32>
    %c0_18 = arith.constant 0 : index
    %c0_19 = arith.constant 0 : index
    %35 = vector.load %arg6[%c0_18, %c0_19] : memref<8x128xf32, #tpu.memory_space<vmem>>, vector<8x128xf32>
    tpu.vector_store %arg6[%c0_18, %c0_19], %34 {strides = array<i32>} : memref<8x128xf32, #tpu.memory_space<vmem>>, vector<8x128xf32>,
    return
  }
}

</mosaic_0001>

<bundles_post_ra>
// kernel: tpu_custom_call.1
= control target key start
LH: loop header
LB: loop body
LE: loop exit
PB: predicated region body
PF: predicated region fallthrough
CT: control target
= control target key end

     0   :  { %11 = vsyncpa [#allocation3], 0  ;;  %s857_s0 = inlined_call_operand.hbm [shape: f32[8,128], index: 0, kind: input, shape index: {}]   ;;  %s858_s1 = inlined_call_operand.hbm [shape: bf16[128,256], index: 1, kind: input, shape index: {}]   ;;  %s859_s2 = inlined_call_operand.hbm [shape: f32[1,256], index: 2, kind: input, shape index: {}]   ;;  %s860_s3 = inlined_call_operand.vmem [shape: f32[1,256], index: 3, kind: input, shape index: {}]   ;;  %s861_s4 = inlined_call_operand.hbm [shape: bf16[256,128], index: 4, kind: input, shape index: {}]   ;;  %s862_s5 = inlined_call_operand.vmem [shape: f32[1,128], index: 5, kind: input, shape index: {}]   ;;  %s863_s6 = inlined_call_operand.hbm [shape: f32[8,128], index: 6, kind: output, shape index: {}]  }
   0x1   :  { %12 = vsyncpa [#allocation6], 0 }
   0x2   :  { %13 = vsyncpa [#allocation9], 0  ;;  %s30_s23 = sshll.u32 %s858_s1, 4  ;;  %s31_s23 = int_to_ptr.hbm [resolvable:$true] %s30_s23 }
   0x3   :  { %14 = vsyncpa [#allocation4], 0  ;;  %s778_s24 = smov [#allocation5]   ;;  %s20_s28 = sshll.u32 %s857_s0, 4  ;;  %s21_s28 = int_to_ptr.hbm [resolvable:$true] %s20_s28 }
   0x4   :  { %s32_s25 = sshll.u32 %s778_s24, 4  ;;  %s779_s29 = smov 128   ;;  %s33_s25 = int_to_ptr.vmem [resolvable:$true] %s32_s25 }
   0x5   :  { %s780_s30 = smov 8   ;;  %s781_s7 = smov [#allocation2]  }
   0x6   :  { %38 = dma.hbm_to_vmem [thread:$0]  %s31_s23, 2048, %s33_s25, [#allocation6], %s779_s29, %s779_s29, %s780_s30  }
   0x7   :  { %s22_s8 = sshll.u32 %s781_s7, 4  ;;  %s44_s11 = sshll.u32 %s859_s2, 4  ;;  %s23_s8 = int_to_ptr.vmem [resolvable:$true] %s22_s8  ;;  %s45_s11 = int_to_ptr.hbm [resolvable:$true] %s44_s11 }
   0x8   :  { %25 = dma.hbm_to_vmem [thread:$0]  %s21_s28, 128, %s23_s8, [#allocation3]  }
   0x9   :  { %s56_s13 = sshll.u32 %s861_s4, 4  ;;  %s782_s14 = smov [#allocation7]   ;;  %s57_s13 = int_to_ptr.hbm [resolvable:$true] %s56_s13 }
   0xa   :  { %s46_s15 = sshll.u32 %s782_s14, 4  ;;  %s783_s0 = smov [#allocation8]   ;;  %s47_s15 = int_to_ptr.vmem [resolvable:$true] %s46_s15 }
   0xb   :  { %49 = dma.hbm_to_vmem [thread:$0]  %s45_s11, 32, %s47_s15, [#allocation6]  }
   0xc   :  { %s58_s16 = sshll.u32 %s783_s0, 4  ;;  %s784_s17 = smov 64   ;;  %s59_s16 = int_to_ptr.vmem [resolvable:$true] %s58_s16 }
   0xd   :  { %s785_s18 = smov 4  }
   0xe   :  { %64 = dma.hbm_to_vmem [thread:$0]  %s57_s13, 2048, %s59_s16, [#allocation9], %s784_s17, %s784_s17, %s785_s18  }
   0xf   :  { %770 = dma.done.wait [#allocation3], 128  }
  0x10   :  { %771 = vsyncadd [#allocation3], 4294967168 }
  0x11   :  { %772 = dma.done.wait [#allocation6], 2080  }
  0x12   :  { %773 = vsyncadd [#allocation6], 4294965216 }
  0x13   :  { %774 = dma.done.wait [#allocation9], 2048  }
  0x14   :  { %775 = vsyncadd [#allocation9], 4294965248  ;;  %v534_v0 = vld [vmem:[#allocation5 + $0x70] sm:$0xf]  ;;  %v619_v1 = vld [vmem:[#allocation5 + $0x74] sm:$0xf0] }
  0x15   :  { %v618_v2 = vld [vmem:[#allocation5 + $0x74] sm:$0xf]  ;;  %v535_v3 = vor.u32 %v619_v1, %v534_v0  ;;  %v536_v4 = vld [vmem:[#allocation5 + $0x78] sm:$0xf0]  ;;  %v526_v5 = vld [vmem:[#allocation5 + $0x60] sm:$0xf] }
  0x16   :  { %v617_v6 = vld [vmem:[#allocation5 + $0x64] sm:$0xf0]  ;;  %v539_v7 = vor.u32 %v618_v2, %v536_v4  ;;  %v616_v8 = vld [vmem:[#allocation5 + $0x64] sm:$0xf]  ;;  %v528_v9 = vld [vmem:[#allocation5 + $0x68] sm:$0xf0] }
  0x17   :  { %181 = vmatpush.bf16.msra.mxu0 %v535_v3  ;;  %v527_v10 = vor.u32 %v617_v6, %v526_v5  ;;  %v531_v11 = vor.u32 %v616_v8, %v528_v9  ;;  %v518_v12 = vld [vmem:[#allocation5 + $0x50] sm:$0xf]  ;;  %v615_v13 = vld [vmem:[#allocation5 + $0x54] sm:$0xf0]  ;;  %v614_v14 = vld [vmem:[#allocation5 + $0x54] sm:$0xf] }
  0x18   :  { %194 = vmatpush.bf16.msra.mxu1 %v539_v7  ;;  %v520_v15 = vld [vmem:[#allocation5 + $0x58] sm:$0xf0]  ;;  %v519_v16 = vor.u32 %v615_v13, %v518_v12  ;;  %v510_v18 = vld [vmem:[#allocation5 + $0x40] sm:$0xf]  ;;  %v613_v19 = vld [vmem:[#allocation5 + $0x44] sm:$0xf0] }
  0x19   :  { %v523_v17 = vor.u32 %v614_v14, %v520_v15  ;;  %v612_v20 = vld [vmem:[#allocation5 + $0x44] sm:$0xf]  ;;  %v512_v21 = vld [vmem:[#allocation5 + $0x48] sm:$0xf0]  ;;  %v511_v22 = vor.u32 %v613_v19, %v510_v18  ;;  %v502_v24 = vld [vmem:[#allocation5 + $0x30] sm:$0xf] }
  0x1a   :  { %v515_v23 = vor.u32 %v612_v20, %v512_v21  ;;  %v611_v25 = vld [vmem:[#allocation5 + $0x34] sm:$0xf0]  ;;  %v610_v26 = vld [vmem:[#allocation5 + $0x34] sm:$0xf]  ;;  %v504_v27 = vld [vmem:[#allocation5 + $0x38] sm:$0xf0] }
  0x1b   :  { %182 = vmatpush.bf16.msra.mxu0 %v527_v10  ;;  %v503_v28 = vor.u32 %v611_v25, %v502_v24  ;;  %v507_v29 = vor.u32 %v610_v26, %v504_v27  ;;  %v494_v30 = vld [vmem:[#allocation5 + $0x20] sm:$0xf]  ;;  %v609_v31 = vld [vmem:[#allocation5 + $0x24] sm:$0xf0]  ;;  %v608_v32 = vld [vmem:[#allocation5 + $0x24] sm:$0xf] }
  0x1c   :  { %195 = vmatpush.bf16.msra.mxu1 %v531_v11  ;;  %v496_v33 = vld [vmem:[#allocation5 + $0x28] sm:$0xf0]  ;;  %v495_v34 = vor.u32 %v609_v31, %v494_v30  ;;  %v486_v36 = vld [vmem:[#allocation5 + $0x10] sm:$0xf]  ;;  %v607_v37 = vld [vmem:[#allocation5 + $0x14] sm:$0xf0] }
  0x1d   :  { %v499_v35 = vor.u32 %v608_v32, %v496_v33  ;;  %v606_v38 = vld [vmem:[#allocation5 + $0x14] sm:$0xf]  ;;  %v488_v39 = vld [vmem:[#allocation5 + $0x18] sm:$0xf0]  ;;  %v487_v40 = vor.u32 %v607_v37, %v486_v36  ;;  %v478_v42 = vld [vmem:[#allocation5] sm:$0xf] }
  0x1e   :  { %v491_v41 = vor.u32 %v606_v38, %v488_v39  ;;  %v605_v43 = vld [vmem:[#allocation5 + $0x4] sm:$0xf0]  ;;  %v604_v44 = vld [vmem:[#allocation5 + $0x4] sm:$0xf]  ;;  %v480_v45 = vld [vmem:[#allocation5 + $0x8] sm:$0xf0] }
  0x1f   :  { %183 = vmatpush.bf16.msra.mxu0 %v519_v16  ;;  %v479_v46 = vor.u32 %v605_v43, %v478_v42  ;;  %v83_v47 = vld [vmem:[#allocation2] sm:$0xff]  ;;  %v483_v48 = vor.u32 %v604_v44, %v480_v45  ;;  %v625_v62 = vld [vmem:[#allocation8 + $0x28] sm:$0xff]  ;;  %v624_v8 = vld [vmem:[#allocation8 + $0x20] sm:$0xff]  ;;  %vm267_vm5 = vcmask 1040384   ;;  %s786_s20 = smov [#allocation10]   ;;  %s464_s24 = sshll.u32 %s863_s6, 4  ;;  %s465_s24 = int_to_ptr.hbm [resolvable:$true] %s464_s24 }
  0x20   :  { %196 = vmatpush.bf16.msra.mxu1 %v523_v17  ;;  %v84_v49 = vpack.c.bf16 %v83_v47, %v83_v47  ;;  %v627_v50 = vld [vmem:[#allocation8 + $0x38] sm:$0xff]  ;;  %v626_v52 = vld [vmem:[#allocation8 + $0x30] sm:$0xff]  ;;  %v633_v63 = vld [vmem:[#allocation8 + $0x68] sm:$0xff]  ;;  %s462_s21 = sshll.u32 %s786_s20, 4  ;;  %s463_s21 = int_to_ptr.vmem [resolvable:$true] %s462_s21 }
  0x21   :  { %v635_v51 = vld [vmem:[#allocation8 + $0x78] sm:$0xff]  ;;  %430 = vmatpush.bf16.msra.mxu2 %v627_v50  ;;  %v634_v53 = vld [vmem:[#allocation8 + $0x70] sm:$0xff]  ;;  %v632_v9 = vld [vmem:[#allocation8 + $0x60] sm:$0xff] }
  0x22   :  { %443 = vmatpush.bf16.msra.mxu3 %v635_v51  ;;  %v623_v20 = vld [vmem:[#allocation8 + $0x18] sm:$0xff]  ;;  %v622_v30 = vld [vmem:[#allocation8 + $0x10] sm:$0xff]  ;;  %v621_v37 = vld [vmem:[#allocation8 + $0x8] sm:$0xff] }
  0x23   :  { %184 = vmatpush.bf16.msra.mxu0 %v511_v22  ;;  %v631_v21 = vld [vmem:[#allocation8 + $0x58] sm:$0xff]  ;;  %v630_v31 = vld [vmem:[#allocation8 + $0x50] sm:$0xff]  ;;  %v629_v38 = vld [vmem:[#allocation8 + $0x48] sm:$0xff] }
  0x24   :  { %197 = vmatpush.bf16.msra.mxu1 %v515_v23 }
  0x25   :  { %431 = vmatpush.bf16.msra.mxu2 %v626_v52 }
  0x26   :  { %444 = vmatpush.bf16.msra.mxu3 %v634_v53 }
  0x27   :  { %185 = vmatpush.bf16.msra.mxu0 %v503_v28 }
  0x28   :  { %198 = vmatpush.bf16.msra.mxu1 %v507_v29 }
  0x29   :  { %432 = vmatpush.bf16.msra.mxu2 %v625_v62 }
  0x2a   :  { %445 = vmatpush.bf16.msra.mxu3 %v633_v63 }
  0x2b   :  { %186 = vmatpush.bf16.msra.mxu0 %v495_v34 }
  0x2c   :  { %199 = vmatpush.bf16.msra.mxu1 %v499_v35 }
  0x2d   :  { %433 = vmatpush.bf16.msra.mxu2 %v624_v8 }
  0x2e   :  { %446 = vmatpush.bf16.msra.mxu3 %v632_v9 }
  0x2f   :  { %187 = vmatpush.bf16.msra.mxu0 %v487_v40  ;;  %v620_v40 = vld [vmem:[#allocation8] sm:$0xff] }
  0x30   :  { %200 = vmatpush.bf16.msra.mxu1 %v491_v41  ;;  %v628_v41 = vld [vmem:[#allocation8 + $0x40] sm:$0xff] }
  0x31   :  { %434 = vmatpush.bf16.msra.mxu2 %v623_v20 }
  0x32   :  { %447 = vmatpush.bf16.msra.mxu3 %v631_v21 }
  0x33   :  { %188 = vmatpush.bf16.msra.mxu0 %v479_v46 }
  0x34   :  { %201 = vmatpush.bf16.msra.mxu1 %v483_v48 }
  0x35   :  { %435 = vmatpush.bf16.msra.mxu2 %v622_v30 }
  0x36   :  { %189 = vmatmul.bf16.vlgmr.msra.gmra.mxu0 %v84_v49  ;;  %448 = vmatpush.bf16.msra.mxu3 %v630_v31 }
  0x37   :  { %202 = vmatmul.bf16.vlgmr.msra.gmra.mxu1 %v84_v49 }
  0x39   :  { %436 = vmatpush.bf16.msra.mxu2 %v621_v37 }
  0x3a   :  { %449 = vmatpush.bf16.msra.mxu3 %v629_v38 }
  0x3d   :  { %437 = vmatpush.bf16.msra.mxu2 %v620_v40 }
  0x3e   :  { %450 = vmatpush.bf16.msra.mxu3 %v628_v41 }
  0xb3   :  { %v834_v54 = vpop.f32.mrf.mxu0 }
  0xb4   :  { %v207_v55 = vrot.slane %v834_v54, 4  ;;  %v219_v56 = vmul.f32 %v834_v54, %v834_v54  ;;  %v839_v57 = vpop.f32.mrf.mxu1 }
  0xb5   :  { %v213_v58 = vrot.slane %v839_v57, 4  ;;  %v220_v59 = vmul.f32 %v839_v57, %v839_v57 }
  0xb6   :  { %v208_v60 = vadd.f32 %v207_v55, %v834_v54  ;;  %v221_v61 = vrot.slane %v219_v56, 4 }
  0xb7   :  { %v214_v0 = vadd.f32 %v213_v58, %v839_v57  ;;  %v227_v1 = vrot.slane %v220_v59, 4 }
  0xb8   :  { %v209_v2 = vrot.slane %v208_v60, 2  ;;  %v222_v3 = vadd.f32 %v221_v61, %v219_v56  ;;  %v263_v56 = vld [vmem:[#allocation7] sm:$0x3] }
  0xb9   :  { %v215_v4 = vrot.slane %v214_v0, 2  ;;  %v228_v5 = vadd.f32 %v227_v1, %v220_v59  ;;  %v271_v1 = vld [vmem:[%s860_s3] sm:$0x3] }
  0xba   :  { %v210_v6 = vadd.f32 %v209_v2, %v208_v60  ;;  %v223_v7 = vrot.slane %v222_v3, 2 }
  0xbb   :  { %v216_v10 = vadd.f32 %v215_v4, %v214_v0  ;;  %v229_v11 = vrot.slane %v228_v5, 2  ;;  %v192_v12 = vpop.f32.mrf.mxu0 }
  0xbc   :  { %v211_v13 = vrot.slane %v210_v6, 1  ;;  %v224_v14 = vadd.f32 %v223_v7, %v222_v3  ;;  %v205_v15 = vpop.f32.mrf.mxu1 }
  0xbd   :  { %v217_v16 = vrot.slane %v216_v10, 1  ;;  %v230_v17 = vadd.f32 %v229_v11, %v228_v5 }
  0xbe   :  { %v212_v18 = vadd.f32 %v211_v13, %v210_v6  ;;  %v225_v19 = vrot.slane %v224_v14, 1 }
  0xbf   :  { %v218_v22 = vadd.f32 %v217_v16, %v216_v10  ;;  %v231_v23 = vrot.slane %v230_v17, 1  ;;  %v645_v16 = vld [vmem:[%s862_s5] ss:$0 sm:$0xff] }
  0xc0   :  { %v226_v24 = vadd.f32 %v225_v19, %v224_v14  ;;  %v233_v25 = vmul.f32 0.125, %v212_v18 }
  0xc1   :  { %v232_v26 = vadd.f32 %v231_v23, %v230_v17  ;;  %v234_v27 = vmul.f32 0.125, %v218_v22 }
  0xc2   :  { %v235_v28 = vmul.f32 0.125, %v226_v24  ;;  %v237_v29 = vmul.f32 %v233_v25, %v233_v25 }
  0xc3   :  { %v236_v32 = vmul.f32 0.125, %v232_v26  ;;  %v238_v33 = vmul.f32 %v234_v27, %v234_v27 }
  0xc4   :  { %v239_v34 = vsub.f32 %v235_v28, %v237_v29 }
  0xc5   :  { %v240_v35 = vsub.f32 %v236_v32, %v238_v33 }
  0xc6   :  { %v241_v36 = vadd.f32 1e-05, %v239_v34 }
  0xc7   :  { %v242_v39 = vadd.f32 1e-05, %v240_v35 }
  0xc8   :  { %646 = vrsqrt.f32 %v241_v36  ;;  %vm249_vm4 = vweird.f32 %v241_v36 }
  0xc9   :  { %648 = vrsqrt.f32 %v242_v39  ;;  %vm259_vm2 = vweird.f32 %v242_v39 }
  0xce   :  { %v647_v42 = vpop.eup %646 }
  0xcf   :  { %v649_v43 = vpop.eup %648  ;;  %v244_v44 = vmul.f32 %v647_v42, %v241_v36  ;;  %vm250_vm1 = vweird.f32 %v647_v42 }
  0xd0   :  { %v254_v45 = vmul.f32 %v649_v43, %v242_v39  ;;  %vm260_vm0 = vweird.f32 %v649_v43  ;;  %vm251_vm6 = vmor %vm249_vm4, %vm250_vm1 }
  0xd1   :  { %v245_v46 = vmul.f32 %v647_v42, %v244_v44  ;;  %vm261_vm3 = vmor %vm259_vm2, %vm260_vm0 }
  0xd2   :  { %v255_v47 = vmul.f32 %v649_v43, %v254_v45 }
  0xd3   :  { %v246_v48 = vmul.f32 0.5, %v245_v46 }
  0xd4   :  { %v256_v49 = vmul.f32 0.5, %v255_v47 }
  0xd5   :  { %v247_v50 = vsub.f32 1.5, %v246_v48 }
  0xd6   :  { %v257_v51 = vsub.f32 1.5, %v256_v49 }
  0xd7   :  { %v248_v52 = vmul.f32 %v647_v42, %v247_v50 }
  0xd8   :  { %v258_v53 = vmul.f32 %v649_v43, %v257_v51 }
  0xd9   :  { %v252_v59 = vsel %vm251_vm6, %v647_v42, %v248_v52 }
  0xda   :  { %v262_v55 = vsel %vm261_vm3, %v649_v43, %v258_v53 }
  0xdb   :  { %v266_v58 = vrot.slane %v262_v55, 7 }
  0xdd   :  { %v268_v60 = vsel %vm267_vm5, %v252_v59, %v266_v58 }
  0xde   :  { %v270_v61 = vmul.f32 %v268_v60, %v263_v56 }
  0xe0   :  { %v273_v62 = vperm.slane %v270_v61, 0  ;;  %v274_v63 = vperm.slane %v270_v61, 1 }
  0xe2   :  { %v278_v0 = vmul.f32 %v274_v63, %v234_v27  ;;  %v277_v2 = vmul.f32 %v273_v62, %v233_v25  ;;  %v285_v6 = vmul.f32 %v273_v62, %v834_v54  ;;  %v286_v8 = vmul.f32 %v274_v63, %v839_v57 }
  0xe4   :  { %v281_v3 = vrot.slane %v278_v0, 7 }
  0xe6   :  { %v282_v4 = vsel %vm267_vm5, %v277_v2, %v281_v3 }
  0xe7   :  { %v284_v5 = vsub.f32 %v271_v1, %v282_v4 }
  0xe9   :  { %v288_v7 = vperm.slane %v284_v5, 0  ;;  %v289_v9 = vperm.slane %v284_v5, 1 }
  0xeb   :  { %v292_v10 = vadd.f32 %v288_v7, %v285_v6  ;;  %v293_v11 = vadd.f32 %v289_v9, %v286_v8 }
  0xed   :  { %v294_v12 = vmax.f32 %v292_v10, 0.0  ;;  %v295_v13 = vmax.f32 %v293_v11, 0.0 }
  0xef   :  { %v296_v14 = vpack.c.bf16 %v294_v12, %v294_v12  ;;  %v297_v15 = vpack.c.bf16 %v295_v13, %v295_v13 }
  0xf1   :  { %438 = vmatmul.bf16.vlgmr.msra.gmra.mxu2 %v296_v14  ;;  %451 = vmatmul.bf16.vlgmr.msra.gmra.mxu3 %v297_v15 }
 0x174   :  { %v439_v17 = vpop.f32.mrf.mxu2  ;;  %v452_v18 = vpop.f32.mrf.mxu3 }
 0x175   :  { %v440_v54 = vadd.f32 %v645_v16, %v439_v17 }
 0x177   :  { %v453_v57 = vadd.f32 %v452_v18, %v440_v54 }
 0x179   :  { %456 = vst [vmem:[#allocation10] sm:$0xff] %v453_v57 }
 0x17a   :  { %467 = dma.vmem_to_hbm [thread:$0]  %s463_s21, 128, %s465_s24, [#allocation4]  }
 0x17c   :  { %v441_v19 = vpop.f32.mrf.mxu2  ;;  %v454_v20 = vpop.f32.mrf.mxu3 }
 0x17d   :  { %776 = dma.done.wait [#allocation4], 128  }
 0x17e   :  { %777 = vsyncadd [#allocation4], 4294967168 }
 0x17f   :  { %472 = vsyncpa [#allocation3], 1 }
 0x180   :  { %473 = vsyncpa [#allocation6], 1 }
 0x181   :  { %474 = vsyncpa [#allocation9], 1 }
 0x182   :  { %475 = vsyncpa [#allocation4], 1 }

</bundles_post_ra>
